<compile_context>
chip_gen: v7x
topology: tpu7x:2x2x1
jax: 0.10.0
libtpu: 0.0.40
codegen_flags: <defaults>
</compile_context>

<pallas_src>
import functools

import jax
import jax.numpy as jnp
from jax.experimental import pallas as pl
from jax.experimental.pallas import tpu as pltpu


def _patch_embed_kernel(x_ref, w_ref, b_ref, o_ref):
    # x_ref: (tm, K) patch rows (compute dtype)
    # w_ref: (K, E)  projection weight (grid-invariant, stays resident)
    # b_ref: (1, E)  bias (f32)
    acc = jnp.dot(x_ref[...], w_ref[...], preferred_element_type=jnp.float32)
    o_ref[...] = (acc + b_ref[...]).astype(o_ref.dtype)


def _round_up(x, m):
    return ((x + m - 1) // m) * m


_TM_CAP = 4096  # rows per tile; large tiles amortize the ~0.35 us per-step overhead


def _choose_tm(M):
    """Pick a row-tile size: multiple of 8, <= _TM_CAP, preferably dividing M."""
    if M <= _TM_CAP:
        return _round_up(M, 8)
    n_tiles = -(-M // _TM_CAP)                # balanced split, >= 2 tiles
    tm = _round_up(-(-M // n_tiles), 8)
    # Prefer a nearby exact divisor of M so no padding / post-slice is needed.
    for cand in range(tm, max(tm // 2, 8) - 1, -8):
        if M % cand == 0:
            return cand
    return tm


@functools.partial(jax.jit,
                   static_argnames=("patch_size", "compute_dtype", "out_dtype"))
def patch_embedding(x, weight, bias, *, patch_size,
                    compute_dtype=jnp.bfloat16, out_dtype=None):
    """x: (B, C, H, W); weight: (E, C, p, p); bias: (E,).

    Returns (B, num_patches, E).  Output dtype defaults to the compute dtype
    (bf16) -- the output store is the dominant HBM traffic for small K.
    """
    if out_dtype is None:
        out_dtype = compute_dtype
    B, C, H, W = x.shape
    E = weight.shape[0]
    p = patch_size
    gh, gw = H // p, W // p
    num_patches = gh * gw
    K = C * p * p
    M = B * num_patches

    # --- host-side im2col in the compute dtype (bf16 halves its HBM traffic) ---
    # (B, C, gh, p, gw, p) -> (B, gh, gw, C, p, p) -> (M, K); K order = (C, ph, pw)
    # matches weight.reshape(E, C*p*p).  (Crop mirrors Conv2d truncation.)
    xq = x[:, :, :gh * p, :gw * p].astype(compute_dtype)
    patches = xq.reshape(B, C, gh, p, gw, p)
    patches = patches.transpose(0, 2, 4, 1, 3, 5)
    patches = patches.reshape(M, K)

    w_mat = weight.reshape(E, K).T.astype(compute_dtype)   # (K, E)
    b_mat = bias.reshape(1, E).astype(jnp.float32)

    # --- row tiling: big tiles, no dummy tiles, padding only as a rare fallback ---
    tm = _choose_tm(M)
    grid = -(-M // tm)                        # cdiv
    m_pad = grid * tm
    if m_pad != M:
        patches = jnp.pad(patches, ((0, m_pad - M), (0, 0)))

    in_b = jnp.dtype(compute_dtype).itemsize
    out_b = jnp.dtype(out_dtype).itemsize

    # VMEM budget, accounting for lane padding (last dim padded to 128 in VMEM).
    K_lane = _round_up(K, 128)
    E_lane = _round_up(E, 128)
    vmem_est = (2 * tm * K_lane * in_b            # double-buffered patch tile
                + 2 * tm * E_lane * out_b         # double-buffered output tile
                + 2 * _round_up(K, 8) * E_lane * in_b   # weight
                + 2 * 8 * E_lane * 4)                   # bias
    vmem_limit = None
    if 2 * vmem_est > 16 * 2**20:             # only raise above v5e's 16 MiB default
        vmem_limit = int(min(64 * 2**20, 2 * vmem_est))

    cost = pl.CostEstimate(
        flops=2 * M * K * E,
        transcendentals=0,
        bytes_accessed=(M * K * in_b + K * E * in_b + E * 4 + M * E * out_b),
    )

    out = pl.pallas_call(
        _patch_embed_kernel,
        out_shape=jax.ShapeDtypeStruct((m_pad, E), out_dtype),
        grid_spec=pltpu.PrefetchScalarGridSpec(
            num_scalar_prefetch=0,
            grid=(grid,),
            in_specs=[
                # patch rows: streamed, default double-buffering
                pl.BlockSpec((tm, K), lambda i: (i, 0)),
                # weight / bias: grid-invariant block index -> fetched once
                pl.BlockSpec((K, E), lambda i: (0, 0)),
                pl.BlockSpec((1, E), lambda i: (0, 0)),
            ],
            out_specs=pl.BlockSpec((tm, E), lambda i: (i, 0)),
        ),
        compiler_params=pltpu.CompilerParams(
            dimension_semantics=("parallel",),
            vmem_limit_bytes=vmem_limit,
        ),
        cost_estimate=cost,
    )(patches, w_mat, b_mat)

    if m_pad != M:
        out = out[:M]
    return out.reshape(B, num_patches, E)


def _reference(x, weight, bias, patch_size):
    # Pure-JAX reference == PyTorch Conv2d (NCHW) -> flatten(2) -> transpose(1, 2).
    y = jax.lax.conv_general_dilated(
        x, weight,
        window_strides=(patch_size, patch_size),
        padding="VALID",
        dimension_numbers=("NCHW", "OIHW", "NCHW"),
    ) + bias.reshape(1, -1, 1, 1)
    B, E, gh, gw = y.shape
    return y.reshape(B, E, gh * gw).transpose(0, 2, 1)


if __name__ == "__main__":
    # Module hyperparameters (from ViT.py), small batch.
    img_size = 32
    patch_size = 4
    in_channels = 3
    embed_dim = 128
    batch = 2

    key = jax.random.PRNGKey(0)
    kx, kw, kb = jax.random.split(key, 3)

    x = jax.random.normal(kx, (batch, in_channels, img_size, img_size),
                          dtype=jnp.float32)
    weight = jax.random.normal(
        kw, (embed_dim, in_channels, patch_size, patch_size),
        dtype=jnp.float32) * 0.02
    bias = jax.random.normal(kb, (embed_dim,), dtype=jnp.float32) * 0.02

    ref = _reference(x, weight, bias, patch_size)
    expected_shape = (batch, (img_size // patch_size) ** 2, embed_dim)

    # f32 compute + f32 output path (tolerance covers MXU bf16-pass rounding).
    out_f32 = patch_embedding(x, weight, bias, patch_size=patch_size,
                              compute_dtype=jnp.float32, out_dtype=jnp.float32)
    out_f32 = jax.block_until_ready(out_f32)
    assert out_f32.shape == expected_shape, (out_f32.shape, expected_shape)
    assert out_f32.dtype == jnp.float32
    assert jnp.allclose(out_f32, ref, atol=5e-3, rtol=5e-3), "f32 mismatch vs reference"

    # Default path: bf16 compute AND bf16 output (output store dominates HBM bytes).
    out_bf16 = patch_embedding(x, weight, bias, patch_size=patch_size)
    out_bf16 = jax.block_until_ready(out_bf16)
    assert out_bf16.shape == expected_shape, (out_bf16.shape, expected_shape)
    assert out_bf16.dtype == jnp.bfloat16
    assert jnp.allclose(out_bf16.astype(jnp.float32), ref,
                        atol=2e-2, rtol=2e-2), "bf16 mismatch vs reference"

    print("KERNEL_OK")
</pallas_src>

<mosaic_0001>
module attributes {stable_mosaic.version = 11 : i64} {
  func.func @_patch_embed_kernel(%arg0: i32, %arg1: memref<128x48xf32, #tpu.memory_space<vmem>>, %arg2: memref<48x128xf32, #tpu.memory_space<vmem>>, %arg3: memref<1x128xf32, #tpu.memory_space<vmem>>, %arg4: memref<128x128xf32, #tpu.memory_space<vmem>>) attributes {dimension_semantics = [#tpu.dimension_semantics<parallel>], iteration_bounds = array<i64: 1>, scalar_prefetch = 0 : i64, scratch_operands = 0 : i64, tpu.core_type = #tpu.core_type<tc>, window_params = [{transform_indices = @transform_0, window_bounds = array<i64: 128, 48>}, {pipeline_mode = #tpu.pipeline_mode<synchronous>, transform_indices = @transform_1, window_bounds = array<i64: 48, 128>}, {pipeline_mode = #tpu.pipeline_mode<synchronous>, transform_indices = @transform_2, window_bounds = array<i64: 1, 128>}, {transform_indices = @transform_3, window_bounds = array<i64: 128, 128>}]} {
    %c0 = arith.constant 0 : index
    %c0_0 = arith.constant 0 : index
    %0 = vector.load %arg1[%c0, %c0_0] : memref<128x48xf32, #tpu.memory_space<vmem>>, vector<128x48xf32>
    %c0_1 = arith.constant 0 : index
    %c0_2 = arith.constant 0 : index
    %1 = vector.load %arg2[%c0_1, %c0_2] : memref<48x128xf32, #tpu.memory_space<vmem>>, vector<48x128xf32>
    %cst = arith.constant dense<0.000000e+00> : vector<128x128xf32>
    %2 = tpu.matmul %0, %1, %cst {dimension_numbers = #tpu.dot_dimension_numbers<[1], [0], [0], [1], [0, 0, 1, 1], [], []>} : vector<128x48xf32>, vector<48x128xf32>, vector<128x128xf32> -> vector<128x128xf32>
    %c0_3 = arith.constant 0 : index
    %c0_4 = arith.constant 0 : index
    %3 = vector.load %arg3[%c0_3, %c0_4] : memref<1x128xf32, #tpu.memory_space<vmem>>, vector<1x128xf32>
    %4 = vector.broadcast %3 : vector<1x128xf32> to vector<128x128xf32>
    %5 = arith.addf %2, %4 : vector<128x128xf32>
    %c0_5 = arith.constant 0 : index
    %c0_6 = arith.constant 0 : index
    %6 = vector.load %arg4[%c0_5, %c0_6] : memref<128x128xf32, #tpu.memory_space<vmem>>, vector<128x128xf32>
    tpu.vector_store %arg4[%c0_5, %c0_6], %5 {strides = array<i32>} : memref<128x128xf32, #tpu.memory_space<vmem>>, vector<128x128xf32>,
    return
  }
  func.func @transform_0(%arg0: i32) -> (i32, i32) {
    %c0_i32 = arith.constant 0 : i32
    %c0_i32_0 = arith.constant 0 : i32
    return %arg0, %c0_i32 : i32, i32
  }
  func.func @transform_1(%arg0: i32) -> (i32, i32) {
    %c0_i32 = arith.constant 0 : i32
    %c0_i32_0 = arith.constant 0 : i32
    %c0_i32_1 = arith.constant 0 : i32
    return %c0_i32, %c0_i32_0 : i32, i32
  }
  func.func @transform_2(%arg0: i32) -> (i32, i32) {
    %c0_i32 = arith.constant 0 : i32
    %c0_i32_0 = arith.constant 0 : i32
    %c0_i32_1 = arith.constant 0 : i32
    return %c0_i32, %c0_i32_0 : i32, i32
  }
  func.func @transform_3(%arg0: i32) -> (i32, i32) {
    %c0_i32 = arith.constant 0 : i32
    %c0_i32_0 = arith.constant 0 : i32
    return %arg0, %c0_i32 : i32, i32
  }
}

</mosaic_0001>

<bundles_post_ra>
// kernel: patch_embedding.1
= control target key start
LH: loop header
LB: loop body
LE: loop exit
PB: predicated region body
PF: predicated region fallthrough
CT: control target
= control target key end

     0   :  { %vm44_vm0 = vcmask 392192   ;;  %s510_s0 = inlined_call_operand.vmem [shape: f32[128,48], index: 0, kind: input, shape index: {}]   ;;  %s511_s1 = inlined_call_operand.vmem [shape: f32[48,128], index: 1, kind: input, shape index: {}]   ;;  %s512_s2 = inlined_call_operand.vmem [shape: f32[1,128], index: 2, kind: input, shape index: {}]   ;;  %s513_s3 = inlined_call_operand.hbm [shape: f32[128,128], index: 3, kind: output, shape index: {}]  }
   0x1   :  { %v31_v0 = vld [vmem:[%s511_s1] sm:$0xff]  ;;  %v32_v1 = vld [vmem:[%s511_s1 + $0x8] sm:$0xff]  ;;  %v33_v2 = vld [vmem:[%s511_s1 + $0x10] sm:$0xff] }
   0x2   :  { %v345_v3 = vpack.c.bf16 %v32_v1, %v31_v0  ;;  %v34_v4 = vld [vmem:[%s511_s1 + $0x18] sm:$0xff]  ;;  %v35_v6 = vld [vmem:[%s511_s1 + $0x20] sm:$0xff]  ;;  %v36_v7 = vld [vmem:[%s511_s1 + $0x28] sm:$0xff] }
   0x3   :  { %v349_v5 = vpack.c.bf16 %v34_v4, %v33_v2  ;;  %v15_v8 = vld [vmem:[%s510_s0] sm:$0xff]  ;;  %v353_v10 = vpack.c.bf16 %v36_v7, %v35_v6 }
   0x4   :  { %346 = vmatprep.subr.bf16.mxu0 %v345_v3  ;;  %357 = vmatprep.subr.bf16.mxu1 %v345_v3  ;;  %v23_v9 = vld [vmem:[%s510_s0 + $0x40] sm:$0xff] }
   0x5   :  { %348 = vmatpush3.bf16.msra.mxu0 %v345_v3  ;;  %360 = vmatpush3.bf16.msra.mxu1 %v345_v3 }
   0x6   :  { %350 = vmatprep.subr.bf16.mxu0 %v349_v5  ;;  %358 = vmatprep.subr.bf16.mxu1 %v349_v5 }
   0x7   :  { %321 = vmatprep.mubr.msk.f32.mxu0 %vm44_vm0, %v15_v8  ;;  %333 = vmatprep.mubr.msk.f32.mxu1 %vm44_vm0, %v23_v9 }
   0x8   :  { %8 = vsyncpa [#allocation3], 0  ;;  %v16_v11 = vld [vmem:[%s510_s0 + $0x8] sm:$0xff]  ;;  %v17_v13 = vld [vmem:[%s510_s0 + $0x10] sm:$0xff] }
   0x9   :  { %352 = vmatpush3.bf16.msra.mxu0 %v349_v5  ;;  %361 = vmatpush3.bf16.msra.mxu1 %v349_v5  ;;  %v24_v12 = vld [vmem:[%s510_s0 + $0x48] sm:$0xff]  ;;  %v25_v14 = vld [vmem:[%s510_s0 + $0x50] sm:$0xff]  ;;  %v18_v15 = vld [vmem:[%s510_s0 + $0x18] sm:$0xff] }
   0xa   :  { %354 = vmatprep.subr.bf16.mxu0 %v353_v10  ;;  %359 = vmatprep.subr.bf16.mxu1 %v353_v10  ;;  %v26_v16 = vld [vmem:[%s510_s0 + $0x58] sm:$0xff]  ;;  %v19_v17 = vld [vmem:[%s510_s0 + $0x20] sm:$0xff]  ;;  %v20_v19 = vld [vmem:[%s510_s0 + $0x28] sm:$0xff] }
   0xb   :  { %v27_v18 = vld [vmem:[%s510_s0 + $0x60] sm:$0xff]  ;;  %v28_v20 = vld [vmem:[%s510_s0 + $0x68] sm:$0xff]  ;;  %v21_v21 = vld [vmem:[%s510_s0 + $0x30] sm:$0xff] }
   0xc   :  { %v29_v22 = vld [vmem:[%s510_s0 + $0x70] sm:$0xff]  ;;  %v22_v23 = vld [vmem:[%s510_s0 + $0x38] sm:$0xff]  ;;  %v270_v25 = vld [vmem:[%s512_s2] ss:$0 sm:$0xff] }
   0xd   :  { %356 = vmatpush3.bf16.msra.mxu0 %v353_v10  ;;  %362 = vmatpush3.bf16.msra.mxu1 %v353_v10  ;;  %v30_v24 = vld [vmem:[%s510_s0 + $0x78] sm:$0xff]  ;;  %s390_s0 = smov [#allocation2]  }
   0xe   :  { %s259_s2 = sshll.u32 %s390_s0, 4  ;;  %s260_s2 = int_to_ptr.vmem [resolvable:$true] %s259_s2 }
   0xf   :  { %s366_s29 = scalar_lea.vmem %s260_s2, 2048  ;;  %p371_p1 = scmp.lt.s32.totalorder %s260_s2, %s260_s2 }
  0x10   :  { %322 = vmatmul.mubr.msk.f32.vlgmr.msra.gmra.mrb[0].mxu0 %vm44_vm0, %v16_v11  ;;  %334 = vmatmul.mubr.msk.f32.vlgmr.msra.gmra.mrb[0].mxu1 %vm44_vm0, %v24_v12  ;;  %p367_p0 = scmp.ne.s32.totalorder %s260_s2, %s366_s29  ;;  %p372_p2 = scmp.lt.s32.totalorder %s366_s29, %s366_s29 }
  0x11   :  { %324 = vmatprep.mubr.msk.f32.mxu0 %vm44_vm0, %v17_v13  ;;  %336 = vmatprep.mubr.msk.f32.mxu1 %vm44_vm0, %v25_v14 }
  0x12   :  { %p373_p3 = por %p372_p2, %p371_p1 }
  0x14   :  { %325 = vmatmul.mubr.msk.f32.gmra.mrb[2].mxu0 %vm44_vm0, %v18_v15  ;;  %337 = vmatmul.mubr.msk.f32.gmra.mrb[2].mxu1 %vm44_vm0, %v26_v16  ;;  %p374_p4 = pnand %p373_p3, %p367_p0 }
  0x15   :  { %327 = vmatprep.mubr.msk.f32.mxu0 %vm44_vm0, %v19_v17  ;;  %339 = vmatprep.mubr.msk.f32.mxu1 %vm44_vm0, %v27_v18 }
  0x18   :  { %328 = vmatmul.mubr.msk.f32.gmra.mrb[4].mxu0 %vm44_vm0, %v20_v19  ;;  %340 = vmatmul.mubr.msk.f32.gmra.mrb[4].mxu1 %vm44_vm0, %v28_v20 }
  0x19   :  { %330 = vmatprep.mubr.msk.f32.mxu0 %vm44_vm0, %v21_v21  ;;  %342 = vmatprep.mubr.msk.f32.mxu1 %vm44_vm0, %v29_v22 }
  0x1c   :  { %331 = vmatmul.mubr.msk.f32.gmra.mrb[6].mxu0 %vm44_vm0, %v22_v23  ;;  %343 = vmatmul.mubr.msk.f32.gmra.mrb[6].mxu1 %vm44_vm0, %v30_v24 }
  0xe3   :  { %v323_v26 = vpop.f32.mrb[0].mxu0  ;;  %v335_v27 = vpop.f32.mrb[0].mxu1 }
  0xe4   :  { %v165_v28 = vadd.f32 %v323_v26, %v270_v25  ;;  %v205_v29 = vadd.f32 %v335_v27, %v270_v25  ;;  %v159_v30 = vpop.f32.mrb[1].mxu0  ;;  %v199_v31 = vpop.f32.mrb[1].mxu1 }
  0xe5   :  { %v160_v32 = vadd.f32 %v270_v25, %v159_v30  ;;  %v200_v33 = vadd.f32 %v270_v25, %v199_v31 }
  0xe6   :  { %239 = vst [vmem:[#allocation2 + $0x8] sm:$0xff] %v165_v28  ;;  %247 = vst [vmem:[#allocation2 + $0x48] sm:$0xff] %v205_v29 }
  0xe7   :  { %238 = vst [vmem:[#allocation2] sm:$0xff] %v160_v32  ;;  %246 = vst [vmem:[#allocation2 + $0x40] sm:$0xff] %v200_v33  ;;  %v326_v34 = vpop.f32.mrb[2].mxu0  ;;  %v338_v35 = vpop.f32.mrb[2].mxu1 }
  0xe8   :  { %v175_v36 = vadd.f32 %v326_v34, %v270_v25  ;;  %v215_v37 = vadd.f32 %v338_v35, %v270_v25  ;;  %v169_v38 = vpop.f32.mrb[3].mxu0  ;;  %v209_v39 = vpop.f32.mrb[3].mxu1 }
  0xe9   :  { %v170_v40 = vadd.f32 %v270_v25, %v169_v38  ;;  %v210_v41 = vadd.f32 %v270_v25, %v209_v39 }
  0xea   :  { %241 = vst [vmem:[#allocation2 + $0x18] sm:$0xff] %v175_v36  ;;  %249 = vst [vmem:[#allocation2 + $0x58] sm:$0xff] %v215_v37 }
  0xeb   :  { %240 = vst [vmem:[#allocation2 + $0x10] sm:$0xff] %v170_v40  ;;  %248 = vst [vmem:[#allocation2 + $0x50] sm:$0xff] %v210_v41  ;;  %v329_v42 = vpop.f32.mrb[4].mxu0  ;;  %v341_v43 = vpop.f32.mrb[4].mxu1 }
  0xec   :  { %v185_v44 = vadd.f32 %v329_v42, %v270_v25  ;;  %v225_v45 = vadd.f32 %v341_v43, %v270_v25  ;;  %v179_v46 = vpop.f32.mrb[5].mxu0  ;;  %v219_v47 = vpop.f32.mrb[5].mxu1 }
  0xed   :  { %v180_v48 = vadd.f32 %v270_v25, %v179_v46  ;;  %v220_v49 = vadd.f32 %v270_v25, %v219_v47 }
  0xee   :  { %243 = vst [vmem:[#allocation2 + $0x28] sm:$0xff] %v185_v44  ;;  %251 = vst [vmem:[#allocation2 + $0x68] sm:$0xff] %v225_v45 }
  0xef   :  { %242 = vst [vmem:[#allocation2 + $0x20] sm:$0xff] %v180_v48  ;;  %250 = vst [vmem:[#allocation2 + $0x60] sm:$0xff] %v220_v49  ;;  %v332_v50 = vpop.f32.mrb[6].mxu0  ;;  %v344_v51 = vpop.f32.mrb[6].mxu1 }
  0xf0   :  { %v195_v52 = vadd.f32 %v332_v50, %v270_v25  ;;  %v235_v53 = vadd.f32 %v344_v51, %v270_v25  ;;  %v189_v54 = vpop.f32.mrb[7].mxu0  ;;  %v229_v55 = vpop.f32.mrb[7].mxu1 }
  0xf1   :  { %v190_v56 = vadd.f32 %v270_v25, %v189_v54  ;;  %v230_v57 = vadd.f32 %v270_v25, %v229_v55 }
  0xf2   :  { %245 = vst [vmem:[#allocation2 + $0x38] sm:$0xff] %v195_v52  ;;  %253 = vst [vmem:[#allocation2 + $0x78] sm:$0xff] %v235_v53 }
  0xf3   :  { %244 = vst [vmem:[#allocation2 + $0x30] sm:$0xff] %v190_v56  ;;  %252 = vst [vmem:[#allocation2 + $0x70] sm:$0xff] %v230_v57 }
  0xf4   :  { %377 = shalt.err (!%p374_p4)
}
  0xf5   :  { %s378_s5 = scalar_lea.hbm %s513_s3, 2048 }
  0xf6   :  { %p379_p5 = scmp.ne.s32.totalorder %s513_s3, %s378_s5  ;;  %p382_p6 = scmp.lt.u32.totalorder %s378_s5, %s513_s3 }
  0xf8   :  { %p384_p7 = pnand %p382_p6, %p379_p5 }
  0xfa   :  { %387 = shalt.err (!%p384_p7)
}
  0xfb   :  { %s391_s10 = smov 128   ;;  %s392_s11 = smov 8  }
  0xfc   :  { %265 = dma.vmem_to_hbm [thread:$0]  %s260_s2, 2048, %s513_s3, [#allocation3], %s391_s10, %s391_s10, %s392_s11  }
  0xfd   :  { %388 = dma.done.wait [#allocation3], 2048  }
  0xfe   :  { %389 = vsyncadd [#allocation3], 4294965248 }
  0xff   :  { %269 = vsyncpa [#allocation3], 1 }

</bundles_post_ra>
